<compile_context>
chip_gen: v7x
topology: tpu7x:2x2x1
jax: 0.10.0
libtpu: 0.0.40
codegen_flags: <defaults>
</compile_context>

<pallas_src>
import math

import jax
import jax.numpy as jnp
from jax.experimental import pallas as pl
from jax.experimental.pallas import tpu as pltpu

TWO_PI = 6.283185307179586
HALF_PI = 1.5707963267948966


def _rff_kernel(x_ref, b_ref, o_ref):
    # x_ref: (tm, K)   b_ref: (K, W)   o_ref: (tm, W)
    # b_ref carries the 2*pi*gamma scale, duplicated cos/sin columns and a
    # final bias row (0 for cos lanes, -pi/2 for sin lanes) driven by a ones
    # column on x, so a single cos produces the whole [cos | sin] output in
    # final lane order (no sin, no select, no per-step iota/mod).
    xb = jnp.dot(x_ref[...], b_ref[...], preferred_element_type=jnp.float32)
    o_ref[...] = jnp.cos(xb).astype(o_ref.dtype)


def _round_up(v, m):
    return ((v + m - 1) // m) * m


def gaussian_rff_forward(x, B, gamma=1.0, *, tile_m=4096):
    """x: (..., in_dim), B: (in_dim, ll) -> (..., 2*ll) = concat([cos, sin], -1)."""
    orig_shape = x.shape
    in_dim = orig_shape[-1]
    assert in_dim == B.shape[0]
    ll = B.shape[1]
    proj = 2 * ll

    out_dtype = x.dtype
    # bf16 x -> native bf16 MXU operands (half the x-tile DMA bytes, bf16
    # stores); everything else runs the dot in f32.
    op_dtype = jnp.bfloat16 if x.dtype == jnp.bfloat16 else jnp.float32

    # Fold the loop-invariant 2*pi*gamma scale into the tiny weight once and
    # duplicate its columns: lanes [0:ll] -> cos phases, [ll:proj] -> sin.
    b_cs = jnp.concatenate([B, B], axis=1).astype(jnp.float32) * (TWO_PI * float(gamma))
    # Per-segment phase bias: 0 on cos lanes, -pi/2 on sin lanes.
    bias_seg = jnp.concatenate([jnp.zeros((ll,), jnp.float32),
                                jnp.full((ll,), -HALF_PI, jnp.float32)])

    x2 = x.reshape(-1, in_dim)
    n = x2.shape[0]

    # Lane-dense output: never emit a last dim < 128 (masked partial stores are
    # ~4.5x slower).  Pack p points per kernel row via a block-diagonal weight
    # (padding a few zero rows if needed) or pad lanes up to a multiple of 128.
    p = 1
    w = proj
    pad_rows = 0
    if proj % 128 != 0:
        cand = 128 // math.gcd(proj, 128)
        if cand <= 8:
            p = cand
            pad_rows = (-n) % p
            w = p * proj
        else:
            w = _round_up(proj, 128)

    if pad_rows:
        x2 = jnp.concatenate([x2, jnp.zeros((pad_rows, in_dim), x2.dtype)], axis=0)
    n_pad = n + pad_rows

    if p > 1:
        x2 = x2.reshape(n_pad // p, p * in_dim)
        bk = jnp.zeros((p * in_dim, w), jnp.float32)
        bias = jnp.zeros((w,), jnp.float32)
        for i in range(p):
            bk = bk.at[i * in_dim:(i + 1) * in_dim,
                       i * proj:(i + 1) * proj].set(b_cs)
            bias = bias.at[i * proj:(i + 1) * proj].set(bias_seg)
    else:
        bk = jnp.zeros((in_dim, w), jnp.float32).at[:, :proj].set(b_cs)
        bias = jnp.zeros((w,), jnp.float32).at[:proj].set(bias_seg)

    # Single-cos trick: ones column on x drives the bias row on the MXU.
    bk = jnp.concatenate([bk, bias[None, :]], axis=0).astype(op_dtype)
    x2 = jnp.concatenate(
        [x2, jnp.ones((x2.shape[0], 1), x2.dtype)], axis=1).astype(op_dtype)

    rows, k_dim = x2.shape

    # Sublane granule of the output dtype: f32 -> 8, bf16 -> 16, 8-bit -> 32.
    granule = {4: 8, 2: 16, 1: 32}.get(jnp.dtype(out_dtype).itemsize, 8)

    # Big tiles amortize the ~0.35us/step grid overhead.
    tm = min(_round_up(tile_m, granule), _round_up(rows, granule))

    # Keep the double-buffered footprint under v5e's 16 MiB scoped-VMEM default
    # (the smallest of all generations) without needing vmem_limit_bytes.
    per_row = 2 * (w * jnp.dtype(out_dtype).itemsize
                   + k_dim * jnp.dtype(op_dtype).itemsize)
    budget = 12 * 1024 * 1024
    max_tm = max(granule, (budget // per_row) // granule * granule)
    tm = min(tm, max_tm)

    # Guarantee >= 2 grid steps: shards the "parallel" axis across both v7x
    # TensorCores and keeps DMA/compute pipelining active everywhere.
    if rows > granule and pl.cdiv(rows, tm) < 2:
        tm = _round_up(pl.cdiv(rows, 2), granule)

    grid = (pl.cdiv(rows, tm),)   # ragged last tile: partial output block is masked

    out = pl.pallas_call(
        _rff_kernel,
        out_shape=jax.ShapeDtypeStruct((rows, w), out_dtype),
        grid_spec=pltpu.PrefetchScalarGridSpec(
            num_scalar_prefetch=0,
            grid=grid,
            in_specs=[
                pl.BlockSpec((tm, k_dim), lambda i: (i, 0)),   # x tile
                pl.BlockSpec((k_dim, w), lambda i: (0, 0)),    # tiny resident weight
            ],
            out_specs=pl.BlockSpec((tm, w), lambda i: (i, 0)),
        ),
        compiler_params=pltpu.CompilerParams(
            dimension_semantics=("parallel",),
        ),
    )(x2, bk)

    if p > 1:
        out = out.reshape(n_pad, proj)[:n]
    elif w != proj:
        out = out[:, :proj]
    return out.reshape(*orig_shape[:-1], proj)


if __name__ == "__main__":
    key = jax.random.PRNGKey(0)
    k_x, k_b, k_x2, k_x3, k_x4, k_b2 = jax.random.split(key, 6)

    TWO = TWO_PI

    def reference(xx, BB, g=1.0):
        xb = xx @ (BB * TWO * g)
        return jnp.concatenate([jnp.cos(xb), jnp.sin(xb)], axis=-1)

    # Module config (forward only uses B, fixed at 3 input rows).
    proj_dims = 64
    gamma = 1.0
    ll = proj_dims // 2
    B = jax.random.normal(k_b, (3, ll), dtype=jnp.float32)

    # Case 1: (batch=2, points=64, coords=3) — packed lane-dense path, auto
    # tile shrunk to give 2 grid steps.
    x = jax.random.normal(k_x, (2, 64, 3), dtype=jnp.float32)
    out = jax.block_until_ready(gaussian_rff_forward(x, B, gamma=gamma))
    assert out.shape == (2, 64, proj_dims)
    assert jnp.allclose(out, reference(x, B, gamma), atol=1e-5, rtol=1e-5)

    # Case 2: ragged multi-step grid (small explicit tile -> partial last tile).
    x_r = jax.random.normal(k_x2, (2, 100, 3), dtype=jnp.float32)
    out_r = jax.block_until_ready(gaussian_rff_forward(x_r, B, gamma=gamma, tile_m=32))
    assert out_r.shape == (2, 100, proj_dims)
    assert jnp.allclose(out_r, reference(x_r, B, gamma), atol=1e-5, rtol=1e-5)

    # Case 3: odd point count -> zero-row padding for the packed path.
    x_o = jax.random.normal(k_x3, (1, 37, 3), dtype=jnp.float32)
    out_o = jax.block_until_ready(gaussian_rff_forward(x_o, B, gamma=gamma))
    assert out_o.shape == (1, 37, proj_dims)
    assert jnp.allclose(out_o, reference(x_o, B, gamma), atol=1e-5, rtol=1e-5)

    # Case 4: proj_dims=24 (unpackable, cand=16>8) -> lane-padded output path.
    proj_small = 24
    B2 = jax.random.normal(k_b2, (3, proj_small // 2), dtype=jnp.float32)
    x_s = jax.random.normal(k_x4, (2, 40, 3), dtype=jnp.float32)
    out_s = jax.block_until_ready(gaussian_rff_forward(x_s, B2, gamma=0.5))
    assert out_s.shape == (2, 40, proj_small)
    assert jnp.allclose(out_s, reference(x_s, B2, 0.5), atol=1e-5, rtol=1e-5)

    # Case 5: bf16 input/output path (bf16 MXU operands, 16-row sublane granule).
    x_bf = x.astype(jnp.bfloat16)
    out_bf = jax.block_until_ready(gaussian_rff_forward(x_bf, B, gamma=gamma))
    assert out_bf.shape == (2, 64, proj_dims) and out_bf.dtype == jnp.bfloat16
    b_eff = (B * TWO * gamma).astype(jnp.bfloat16).astype(jnp.float32)
    bias_bf = jnp.asarray(-HALF_PI, jnp.bfloat16).astype(jnp.float32)
    xb_ref = x_bf.astype(jnp.float32) @ b_eff
    ref_bf = jnp.concatenate([jnp.cos(xb_ref), jnp.cos(xb_ref + bias_bf)], axis=-1)
    assert jnp.allclose(out_bf.astype(jnp.float32), ref_bf, atol=2e-2)

    print("KERNEL_OK")
</pallas_src>

<mosaic_0001>
module attributes {stable_mosaic.version = 11 : i64} {
  func.func @_rff_kernel(%arg0: i32, %arg1: memref<32x7xf32, #tpu.memory_space<vmem>>, %arg2: memref<7x128xf32, #tpu.memory_space<vmem>>, %arg3: memref<32x128xf32, #tpu.memory_space<vmem>>) attributes {dimension_semantics = [#tpu.dimension_semantics<parallel>], iteration_bounds = array<i64: 2>, scalar_prefetch = 0 : i64, scratch_operands = 0 : i64, tpu.core_type = #tpu.core_type<tc>, window_params = [{transform_indices = @transform_0, window_bounds = array<i64: 32, 7>}, {pipeline_mode = #tpu.pipeline_mode<synchronous>, transform_indices = @transform_1, window_bounds = array<i64: 7, 128>}, {transform_indices = @transform_2, window_bounds = array<i64: 32, 128>}]} {
    %c0 = arith.constant 0 : index
    %c0_0 = arith.constant 0 : index
    %0 = vector.load %arg1[%c0, %c0_0] : memref<32x7xf32, #tpu.memory_space<vmem>>, vector<32x7xf32>
    %c0_1 = arith.constant 0 : index
    %c0_2 = arith.constant 0 : index
    %1 = vector.load %arg2[%c0_1, %c0_2] : memref<7x128xf32, #tpu.memory_space<vmem>>, vector<7x128xf32>
    %cst = arith.constant dense<0.000000e+00> : vector<32x128xf32>
    %2 = tpu.matmul %0, %1, %cst {dimension_numbers = #tpu.dot_dimension_numbers<[1], [0], [0], [1], [0, 0, 1, 1], [], []>} : vector<32x7xf32>, vector<7x128xf32>, vector<32x128xf32> -> vector<32x128xf32>
    %3 = math.cos %2 : vector<32x128xf32>
    %c0_3 = arith.constant 0 : index
    %c0_4 = arith.constant 0 : index
    %4 = vector.load %arg3[%c0_3, %c0_4] : memref<32x128xf32, #tpu.memory_space<vmem>>, vector<32x128xf32>
    tpu.vector_store %arg3[%c0_3, %c0_4], %3 {strides = array<i32>} : memref<32x128xf32, #tpu.memory_space<vmem>>, vector<32x128xf32>,
    return
  }
  func.func @transform_0(%arg0: i32) -> (i32, i32) {
    %c0_i32 = arith.constant 0 : i32
    %c0_i32_0 = arith.constant 0 : i32
    return %arg0, %c0_i32 : i32, i32
  }
  func.func @transform_1(%arg0: i32) -> (i32, i32) {
    %c0_i32 = arith.constant 0 : i32
    %c0_i32_0 = arith.constant 0 : i32
    %c0_i32_1 = arith.constant 0 : i32
    return %c0_i32, %c0_i32_0 : i32, i32
  }
  func.func @transform_2(%arg0: i32) -> (i32, i32) {
    %c0_i32 = arith.constant 0 : i32
    %c0_i32_0 = arith.constant 0 : i32
    return %arg0, %c0_i32 : i32, i32
  }
}

</mosaic_0001>

<bundles_post_ra>
// kernel: tpu_custom_call.1
= control target key start
LH: loop header
LB: loop body
LE: loop exit
PB: predicated region body
PF: predicated region fallthrough
CT: control target
= control target key end

     0   :  { %7 = vsyncpa [#allocation3], 0  ;;  %s1360_s0 = inlined_call_operand.vmem [shape: f32[64,7], index: 0, kind: input, shape index: {}]   ;;  %s1361_s1 = inlined_call_operand.vmem [shape: f32[7,128], index: 1, kind: input, shape index: {}]   ;;  %s1362_s2 = inlined_call_operand.hbm [shape: f32[64,128], index: 2, kind: output, shape index: {}]  }
   0x1   :  { %9 = vsyncpa [#allocation3 + $0x1], 0  ;;  %s960_s9 = smov 0   ;;  %s962_s10 = smov 0  }
   0x2   :  { %s964_s11 = smov 0   ;;  %s966_s12 = smov 0  }
   0x3 LB: > { %s981_s13 = sadd.s32 4294967295, %s934_s12   ;;  %s744_s14 = sadd.s32 4294967294, %s934_s12   ;;  %s934_s12 = sphi %s966_s12, %s1374_s12   ;;  %s930_s11 = sphi %s964_s11, %s1373_s11   ;;  %s926_s10 = sphi %s962_s10, %s1372_s10   ;;  %s922_s9 = sphi %s960_s9, %s1371_s9  }
   0x4   : > { %s985_s15 = sadd.s32 1, %s934_s12   ;;  %s69_s16 = sadd.s32 1, %s930_s11 }
   0x5   : > { %s66_s17 = ssub.s32 %s934_s12, %s985_s15  ;;  %p79_p0 = scmp.ne.s32.totalorder %s930_s11, %s926_s10 }
   0x6   : > { %p67_p1 = scmp.eq.s32.totalorder %s66_s17, 0  ;;  %p80_p2 = scmp.eq.s32.totalorder %s981_s13, 1 }
   0x7   : > { %p85_p3 = scmp.ne.s32.totalorder %s926_s10, %s922_s9  ;;  %p86_p4 = scmp.eq.s32.totalorder %s744_s14, 1 }
   0x8   : > { %s996_s18 = scalar_select %p67_p1, %s930_s11, %s69_s16  }
   0x9   : > { %p998_p5 = por %p80_p2, %p79_p0  ;;  %p1002_p6 = por %p86_p4, %p85_p3 }
   0xa   : > { %p747_p7 = scmp.ge.s32.totalorder %s934_s12, 1  ;;  %p116_p8 = scmp.lt.s32.totalorder %s934_s12, 3 }
   0xc   : > { %p117_p9 = pnand %p747_p7, %p116_p8 }
   0xd   : > { %v149_v0 = vld [vmem:[%s1361_s1] sm:$0x7f] (!%p117_p9)  ;;  %vm163_vm0 = vcmask (!%p117_p9), 1046528   ;;  %s749_s23 = sshll.u32 (!%p117_p9), %s981_s13, 2  ;;  %vm150_vm1 = vcmask (!%p117_p9), 56320   ;;  %s135_s28 = sand.u32 (!%p117_p9), 1, %s926_s10  }
   0xe   : > { %120 = sbr.rel (%p117_p9) target bundleno = 387 (0x183), region = 28  ;;  %783 = vmatprep.subr.msk.mxu0 (!%p117_p9), %vm163_vm0, %v149_v0  ;;  %791 = vmatprep.subr.msk.mxu1 (!%p117_p9), %vm163_vm0, %v149_v0  ;;  %p139_p10 = scmp.lt.s32.totalorder (!%p117_p9), %s749_s23, 7  ;;  %v936_v36 = vmov (!%p117_p9), 683565275   ;;  %v937_v40 = vmov (!%p117_p9), 2475754826  }
   0xf   : > { %784 = vmatpush3.msk.msra.mxu0 (!%p117_p9), %vm163_vm0, %v149_v0  ;;  %792 = vmatpush3.msk.msra.mxu1 (!%p117_p9), %vm163_vm0, %v149_v0  ;;  %v938_v42 = vmov (!%p117_p9), 2131351028   ;;  %v939_v44 = vmov (!%p117_p9), 2102212464   ;;  %v940_v46 = vmov (!%p117_p9), 920167782  }
  0x10   : > { %v941_v53 = vmov (!%p117_p9), 1326507024   ;;  %s748_s29 = sshll.u32 (!%p117_p9), %s135_s28, 5  ;;  %s777_s3 = sshll.u32 (!%p117_p9), %s981_s13, 9 }
  0x11   : > { %s1272_s30 = scalar_lea.vmem (!%p117_p9), [#allocation2], %s748_s29  ;;  %s1311_s7 = scalar_lea.hbm (!%p117_p9), %s1362_s2, %s777_s3 }
  0x12   : > { %s682_s4 = sshll.u32 (!%p117_p9), %s1272_s30, 4  ;;  %s1319_s8 = scalar_lea.sflag (!%p117_p9), [#allocation3], %s135_s28  ;;  %s1313_s4 = int_to_ptr.vmem [resolvable:$true] %s682_s4 }
  0x13   : > { %s872_s13 = scalar_lea.vmem (!%p117_p9), %s1313_s4, 512  ;;  %s942_s14 = smov (!%p117_p9), [#allocation2]  }
  0x14   : > { %p873_p11 = scmp.ne.s32.totalorder (!%p117_p9), %s1313_s4, %s872_s13  ;;  %s876_s16 = sshll.u32 (!%p117_p9), %s942_s14, 4  ;;  %s877_s16 = int_to_ptr.vmem [resolvable:$false] %s876_s16 }
  0x15   : > { %s1376_s23 = smov (!%p139_p10, %s749_s23), 7  ;;  %s878_s17 = scalar_lea.vmem %s877_s16, 1024 }
  0x16   : > { %s750_s24 = sshll.u32 %s1376_s23, 3  ;;  %p874_p12 = pnand %p873_p11, %p998_p5 }
  0x17   : > { %s142_s27 = scalar_lea.vmem %s1360_s0, %s750_s24  ;;  %p879_p0 = scmp.lt.s32.totalorder %s1313_s4, %s877_s16 }
  0x18   : > { %v145_v1 = vld [vmem:[%s142_s27] sm:$0xff]  ;;  %v147_v2 = vld [vmem:[%s142_s27 + $0x10] sm:$0xff]  ;;  %v146_v3 = vld [vmem:[%s142_s27 + $0x8] sm:$0xff]  ;;  %p875_p13 = pneg %p874_p12  ;;  %p880_p1 = scmp.lt.s32.totalorder %s878_s17, %s872_s13 }
  0x19   : > { %785 = vmatprep.mubr.msk.f32.mxu0 %vm150_vm1, %v145_v1  ;;  %788 = vmatprep.mubr.msk.f32.mxu1 %vm150_vm1, %v147_v2  ;;  %v148_v4 = vld [vmem:[%s142_s27 + $0x18] sm:$0xff] }
  0x1a   : > { %786 = vmatmul.mubr.msk.f32.vlgmr.msra.gmra.mrb[0].mxu0 %vm150_vm1, %v146_v3  ;;  %789 = vmatmul.mubr.msk.f32.vlgmr.msra.gmra.mrb[0].mxu1 %vm150_vm1, %v148_v4  ;;  %p881_p2 = por %p880_p1, %p879_p0 }
  0x1c   : > { %p882_p3 = pnand %p881_p2, %p875_p13 }
  0xed   : > { %v1015_v5 = vpop.f32.mrb[0].mxu0  ;;  %v1017_v6 = vpop.f32.mrb[0].mxu1 }
  0xee   : > { %v355_v7 = vand.u32 2147483647, %v1015_v5  ;;  %v358_v8 = vand.u32 2139095040, %v1015_v5  ;;  %v1021_v9 = vpop.f32.mrb[1].mxu0  ;;  %v1023_v10 = vpop.f32.mrb[1].mxu1  ;;  %v564_v12 = vand.u32 2139095040, %v1017_v6 }
  0xef   : > { %v561_v11 = vand.u32 2147483647, %v1017_v6  ;;  %v255_v17 = vand.u32 2139095040, %v1021_v9  ;;  %v252_v25 = vand.u32 2147483647, %v1021_v9 }
  0xf0   : > { %v359_v13 = vshrl.u32 %v358_v8, 23  ;;  %v362_v14 = vand.u32 8388607, %v355_v7  ;;  %v565_v15 = vshrl.u32 %v564_v12, 23 }
  0xf1   : > { %v568_v16 = vand.u32 8388607, %v561_v11  ;;  %v256_v20 = vshrl.u32 %v255_v17, 23  ;;  %v1039_v33 = vand.u32 8388607, %v252_v25 }
  0xf2   : > { %v760_v18 = vadd.s32 4294967169, %v359_v13  ;;  %v768_v19 = vadd.s32 4294967169, %v565_v15  ;;  %v363_v21 = vor.u32 8388608, %v362_v14 }
  0xf3   : > { %v569_v23 = vor.u32 8388608, %v568_v16  ;;  %v756_v26 = vadd.s32 4294967169, %v256_v20 }
  0xf4   : > { %v365_v22 = vadd.s32 1, %v760_v18  ;;  %v571_v24 = vadd.s32 1, %v768_v19  ;;  %v1033_v31 = vshll.u32 %v363_v21, 8 }
  0xf5   : > { %v1035_v32 = vshll.u32 %v569_v23, 8  ;;  %v1041_v34 = vadd.s32 1, %v756_v26 }
  0xf6   : > { %vm366_vm2 = vcmp.gt.s32.totalorder %v365_v22, 0  ;;  %vm572_vm3 = vcmp.gt.s32.totalorder %v571_v24, 0 }
  0xf7   : > { %v367_v27 = vsel %vm366_vm2, %v365_v22, 0  ;;  %v573_v30 = vsel %vm572_vm3, %v571_v24, 0  ;;  %vm263_vm8 = vcmp.gt.s32.totalorder %v1041_v34, 0 }
  0xf8   : > { %v368_v28 = vshrl.u32 %v367_v27, 5  ;;  %v369_v29 = vand.u32 31, %v367_v27  ;;  %v1044_v38 = vshrl.u32 %v573_v30, 5  ;;  %v575_v39 = vand.u32 31, %v573_v30 }
  0xfa   : > { %v370_v35 = vsub.s32 32, %v369_v29  ;;  %v372_v37 = vshll.u32 %v936_v36, %v369_v29  ;;  %v375_v41 = vshll.u32 %v937_v40, %v369_v29  ;;  %v378_v43 = vshll.u32 %v938_v42, %v369_v29 }
  0xfb   : > { %v381_v45 = vshll.u32 %v939_v44, %v369_v29  ;;  %v384_v47 = vshll.u32 %v940_v46, %v369_v29  ;;  %vm387_vm4 = vcmp.lt.s32.totalorder %v368_v28, 1  ;;  %vm388_vm5 = vcmp.lt.s32.totalorder %v368_v28, 2 }
  0xfc   : > { %v373_v48 = vshrl.u32 %v937_v40, %v370_v35  ;;  %v376_v49 = vshrl.u32 %v938_v42, %v370_v35  ;;  %v379_v50 = vshrl.u32 %v939_v44, %v370_v35  ;;  %v371_v51 = vshrl.u32 %v936_v36, %v370_v35 }
  0xfd   : > { %v382_v52 = vshrl.u32 %v940_v46, %v370_v35  ;;  %v385_v54 = vshrl.u32 %v941_v53, %v370_v35  ;;  %v576_v58 = vsub.s32 32, %v575_v39  ;;  %vm389_vm6 = vcmp.lt.s32.totalorder %v368_v28, 3 }
  0xfe   : > { %v374_v55 = vor.u32 %v373_v48, %v372_v37  ;;  %v377_v56 = vor.u32 %v376_v49, %v375_v41  ;;  %v380_v57 = vor.u32 %v379_v50, %v378_v43  ;;  %vm390_vm7 = vcmp.lt.s32.totalorder %v368_v28, 4 }
  0xff   : > { %v383_v59 = vor.u32 %v382_v52, %v381_v45  ;;  %v386_v60 = vor.u32 %v385_v54, %v384_v47  ;;  %v578_v4 = vshll.u32 %v936_v36, %v575_v39  ;;  %v579_v13 = vshrl.u32 %v937_v40, %v576_v58 }
 0x100   : > { %v391_v61 = vsel %vm387_vm4, %v371_v51, %v374_v55  ;;  %v392_v62 = vsel %vm390_vm7, %v380_v57, 2102212464  ;;  %v395_v63 = vsel %vm387_vm4, %v374_v55, %v377_v56  ;;  %v399_v0 = vsel %vm387_vm4, %v377_v56, %v380_v57 }
 0x101   : > { %v393_v1 = vsel %vm389_vm6, %v377_v56, %v392_v62  ;;  %v396_v2 = vsel %vm390_vm7, %v383_v59, 920167782  ;;  %v400_v3 = vsel %vm390_vm7, %v386_v60, 1326507024  ;;  %v581_v14 = vshll.u32 %v937_v40, %v575_v39 }
 0x102   : > { %v397_v8 = vsel %vm389_vm6, %v380_v57, %v396_v2  ;;  %v401_v12 = vsel %vm389_vm6, %v383_v59, %v400_v3  ;;  %v394_v15 = vsel %vm388_vm5, %v391_v61, %v393_v1  ;;  %v582_v18 = vshrl.u32 %v938_v42, %v576_v58 }
 0x103   : > { %v398_v16 = vsel %vm388_vm5, %v395_v63, %v397_v8  ;;  %v402_v17 = vsel %vm388_vm5, %v399_v0, %v401_v12  ;;  %v580_v23 = vor.u32 %v579_v13, %v578_v4  ;;  %v584_v26 = vshll.u32 %v938_v42, %v575_v39 }
 0x104   : > { %v1068_v19 = vmul.u32.u64.low %v1033_v31, %v402_v17  ;;  %v1069_v20 = vmul.u32.u64.high %v1033_v31, %v402_v17, %v1068_v19  ;;  %v1072_v21 = vmul.u32.u64.low %v1033_v31, %v398_v16  ;;  %v1073_v22 = vmul.u32.u64.high %v1033_v31, %v398_v16, %v1072_v21 }
 0x105   : > { %v583_v24 = vor.u32 %v582_v18, %v581_v14  ;;  %v585_v27 = vshrl.u32 %v939_v44, %v576_v58  ;;  %v577_v28 = vshrl.u32 %v936_v36, %v576_v58  ;;  %v587_v29 = vshll.u32 %v939_v44, %v575_v39 }
 0x106   : > { %v588_v30 = vshrl.u32 %v940_v46, %v576_v58  ;;  %v591_v35 = vshrl.u32 %v941_v53, %v576_v58  ;;  %v410_v37 = vmul.u32 %v1033_v31, %v394_v15  ;;  %v590_v43 = vshll.u32 %v940_v46, %v575_v39 }
 0x107   : > { %v586_v41 = vor.u32 %v585_v27, %v584_v26  ;;  %vm593_vm9 = vcmp.lt.s32.totalorder %v1044_v38, 1  ;;  %vm412_vm10 = vc.u32 %v1069_v20, %v1072_v21  ;;  %v413_v45 = vadd.s32 1, %v1073_v22 }
 0x108   : > { %v589_v47 = vor.u32 %v588_v30, %v587_v29  ;;  %vm594_vm11 = vcmp.lt.s32.totalorder %v1044_v38, 2  ;;  %v592_v48 = vor.u32 %v591_v35, %v590_v43  ;;  %vm595_vm12 = vcmp.lt.s32.totalorder %v1044_v38, 3 }
 0x109   : > { %vm596_vm13 = vcmp.lt.s32.totalorder %v1044_v38, 4  ;;  %v601_v49 = vsel %vm593_vm9, %v580_v23, %v583_v24  ;;  %v414_v31 = vsel %vm412_vm10, %v413_v45, %v1073_v22  ;;  %v605_v51 = vsel %vm593_vm9, %v583_v24, %v586_v41 }
 0x10a   : > { %v598_v50 = vsel %vm596_vm13, %v586_v41, 2102212464  ;;  %v602_v39 = vsel %vm596_vm13, %v589_v47, 920167782  ;;  %v415_v52 = vadd.s32 %v414_v31, %v410_v37  ;;  %v597_v54 = vsel %vm593_vm9, %v577_v28, %v580_v23 }
 0x10b   : > { %v603_v55 = vsel %vm595_vm12, %v586_v41, %v602_v39  ;;  %v606_v56 = vsel %vm596_vm13, %v592_v48, 1326507024  ;;  %v599_v57 = vsel %vm595_vm12, %v583_v24, %v598_v50  ;;  %v264_v60 = vsel %vm263_vm8, %v1041_v34, 0 }
 0x10c   : > { %v604_v58 = vsel %vm594_vm11, %v601_v49, %v603_v55  ;;  %v607_v59 = vsel %vm595_vm12, %v589_v47, %v606_v56  ;;  %v416_v61 = vadd.s32 536870912, %v415_v52  ;;  %v600_v4 = vsel %vm594_vm11, %v597_v54, %v599_v57 }
 0x10d   : > { %v608_v62 = vsel %vm594_vm11, %v605_v51, %v607_v59  ;;  %v1100_v63 = vmul.u32.u64.low %v1035_v32, %v604_v58  ;;  %v1101_v0 = vmul.u32.u64.high %v1035_v32, %v604_v58, %v1100_v63  ;;  %v266_v8 = vand.u32 31, %v264_v60 }
 0x10e   : > { %v1105_v1 = vmul.u32.u64.low %v1035_v32, %v608_v62  ;;  %v1106_v2 = vmul.u32.u64.high %v1035_v32, %v608_v62, %v1105_v1  ;;  %v1108_v3 = vshrl.u32 %v416_v61, 30  ;;  %v458_v34 = vand.u32 2147483647, %v1023_v10 }
 0x10f   : > { %v619_v13 = vadd.s32 1, %v1101_v0  ;;  %v260_v14 = vor.u32 8388608, %v1039_v33  ;;  %v267_v15 = vsub.s32 32, %v266_v8  ;;  %v616_v16 = vmul.u32 %v1035_v32, %v600_v4 }
 0x110   : > { %v418_v12 = vshll.u32 %v1108_v3, 30  ;;  %vm618_vm14 = vc.u32 %v1106_v2, %v1100_v63  ;;  %v461_v17 = vand.u32 2139095040, %v1023_v10  ;;  %v1125_v24 = vand.u32 8388607, %v458_v34 }
 0x111   : > { %v620_v38 = vsel %vm618_vm14, %v619_v13, %v1101_v0  ;;  %v270_v22 = vshrl.u32 %v937_v40, %v267_v15  ;;  %v273_v23 = vshrl.u32 %v938_v42, %v267_v15  ;;  %v269_v32 = vshll.u32 %v936_v36, %v266_v8 }
 0x112   : > { %v419_v18 = vsub.s32 %v415_v52, %v418_v12  ;;  %v621_v19 = vadd.s32 %v620_v38, %v616_v16  ;;  %v276_v26 = vshrl.u32 %v939_v44, %v267_v15  ;;  %v1129_v27 = vshll.u32 %v260_v14, 8 }
 0x113   : > { %v265_v29 = vshrl.u32 %v264_v60, 5  ;;  %v272_v30 = vshll.u32 %v937_v40, %v266_v8  ;;  %v462_v35 = vshrl.u32 %v461_v17, 23  ;;  %v411_v37 = vadd.s32 %v1072_v21, %v1069_v20 }
 0x114   : > { %v421_v33 = vsub.s32 0, %v419_v18  ;;  %v622_v28 = vadd.s32 536870912, %v621_v19  ;;  %v271_v43 = vor.u32 %v270_v22, %v269_v32  ;;  %v275_v45 = vshll.u32 %v938_v42, %v266_v8 }
 0x115   : > { %v274_v48 = vor.u32 %v273_v23, %v272_v30  ;;  %v278_v49 = vshll.u32 %v939_v44, %v266_v8  ;;  %v279_v31 = vshrl.u32 %v940_v46, %v267_v15  ;;  %v281_v51 = vshll.u32 %v940_v46, %v266_v8 }
 0x116   : > { %v761_v41 = vmin.u32 %v421_v33, %v419_v18  ;;  %v1135_v47 = vshrl.u32 %v622_v28, 30  ;;  %v277_v39 = vor.u32 %v276_v26, %v275_v45  ;;  %v282_v52 = vshrl.u32 %v941_v53, %v267_v15 }
 0x117   : > { %v280_v20 = vor.u32 %v279_v31, %v278_v49  ;;  %vm284_vm15 = vcmp.lt.s32.totalorder %v265_v29, 1  ;;  %v764_v21 = vadd.s32 4294967169, %v462_v35  ;;  %vm285_vm0 = vcmp.lt.s32.totalorder %v265_v29, 2 }
 0x118   : > { %v423_v50 = vclz %v761_v41  ;;  %v624_v54 = vshll.u32 %v1135_v47, 30  ;;  %v283_v56 = vor.u32 %v282_v52, %v281_v51  ;;  %vm287_vm1 = vcmp.lt.s32.totalorder %v265_v29, 4 }
 0x119   : > { %vm286_vm2 = vcmp.lt.s32.totalorder %v265_v29, 3  ;;  %v292_v58 = vsel %vm284_vm15, %v271_v43, %v274_v48  ;;  %v293_v59 = vsel %vm287_vm1, %v280_v20, 920167782  ;;  %v289_v60 = vsel %vm287_vm1, %v277_v39, 2102212464 }
 0x11a   : > { %v762_v55 = vadd.s32 4294967294, %v423_v50  ;;  %v1142_v57 = vsub.s32 %v621_v19, %v624_v54  ;;  %v294_v61 = vsel %vm286_vm2, %v277_v39, %v293_v59  ;;  %v297_v62 = vsel %vm287_vm1, %v283_v56, 1326507024 }
 0x11b   : > { %v268_v4 = vshrl.u32 %v936_v36, %v267_v15  ;;  %v296_v8 = vsel %vm284_vm15, %v274_v48, %v277_v39  ;;  %v441_v14 = vsub.s32 4, %v1108_v3  ;;  %v298_v16 = vsel %vm286_vm2, %v280_v20, %v297_v62 }
 0x11c   : > { %vm763_vm3 = vcmp.lt.s32.totalorder %v762_v55, 0  ;;  %v627_v1 = vsub.s32 0, %v1142_v57  ;;  %v290_v19 = vsel %vm286_vm2, %v274_v48, %v289_v60  ;;  %v295_v22 = vsel %vm285_vm0, %v292_v58, %v294_v61 }
 0x11d   : > { %v426_v0 = vsel %vm763_vm3, 0, %v762_v55  ;;  %v288_v38 = vsel %vm284_vm15, %v268_v4, %v271_v43  ;;  %v299_v15 = vsel %vm285_vm0, %v296_v8, %v298_v16  ;;  %v468_v35 = vadd.s32 1, %v764_v21 }
 0x11e   : > { %v427_v12 = vsub.s32 32, %v426_v0  ;;  %v431_v13 = vsub.s32 4294967266, %v426_v0  ;;  %v769_v17 = vmin.u32 %v627_v1, %v1142_v57  ;;  %v428_v23 = vshll.u32 %v419_v18, %v426_v0 }
 0x11f   : > { %v1157_v28 = vmul.u32.u64.low %v1129_v27, %v299_v15  ;;  %v1158_v30 = vmul.u32.u64.high %v1129_v27, %v299_v15, %v1157_v28  ;;  %v1161_v49 = vmul.u32.u64.low %v1129_v27, %v295_v22  ;;  %v1162_v43 = vmul.u32.u64.high %v1129_v27, %v295_v22, %v1161_v49 }
 0x120   : > { %v429_v33 = vshrl.u32 %v411_v37, %v427_v12  ;;  %v432_v32 = vadd.s32 127, %v431_v13  ;;  %v629_v26 = vclz %v769_v17  ;;  %vm1167_vm4 = vcmp.le.f32.partialorder %v355_v7, 0.7853982 }
 0x121   : > { %vm357_vm5 = vcmp.lt.s32.totalorder %v1015_v5, 0  ;;  %vm469_vm6 = vcmp.gt.s32.totalorder %v468_v35, 0  ;;  %v291_v31 = vsel %vm285_vm0, %v288_v38, %v290_v19  ;;  %v466_v50 = vor.u32 8388608, %v1125_v24 }
 0x122   : > { %v430_v41 = vor.u32 %v429_v33, %v428_v23  ;;  %v433_v45 = vshll.u32 %v432_v32, 23  ;;  %v770_v37 = vadd.s32 4294967294, %v629_v26  ;;  %v470_v39 = vsel %vm469_vm6, %v468_v35, 0 }
 0x123   : > { %v442_v52 = vsel %vm357_vm5, %v441_v14, %v1108_v3  ;;  %vm309_vm8 = vc.u32 %v1158_v30, %v1161_v49  ;;  %v310_v20 = vadd.s32 1, %v1162_v43  ;;  %v472_v21 = vand.u32 31, %v470_v39 }
 0x124   : > { %v434_v48 = vor.u32 4788187, %v433_v45  ;;  %v437_v51 = vcvt.s32.f32 %v430_v41  ;;  %vm771_vm7 = vcmp.lt.s32.totalorder %v770_v37, 0  ;;  %v617_v29 = vadd.s32 %v1100_v63, %v1106_v2 }
 0x125   : > { %v632_v54 = vsel %vm771_vm7, 0, %v770_v37  ;;  %v307_v58 = vmul.u32 %v1129_v27, %v291_v31  ;;  %v444_v3 = vsel %vm1167_vm4, 0, %v442_v52  ;;  %v311_v60 = vsel %vm309_vm8, %v310_v20, %v1162_v43 }
 0x126   : > { %v435_v7 = vand.u32 2147483647, %v434_v48  ;;  %v633_v55 = vsub.s32 32, %v632_v54  ;;  %v637_v56 = vsub.s32 4294967266, %v632_v54  ;;  %v473_v61 = vsub.s32 32, %v472_v21 }
 0x127   : > { %vm563_vm9 = vcmp.lt.s32.totalorder %v1017_v6, 0  ;;  %v634_v62 = vshll.u32 %v1142_v57, %v632_v54  ;;  %v312_v4 = vadd.s32 %v311_v60, %v307_v58  ;;  %v647_v63 = vsub.s32 4, %v1135_v47 }
 0x128   : > { %v438_v59 = vmul.f32 %v437_v51, %v435_v7  ;;  %v635_v0 = vshrl.u32 %v617_v29, %v633_v55  ;;  %v638_v1 = vadd.s32 127, %v637_v56  ;;  %v1189_v2 = vshrl.u32 %v470_v39, 5 }
 0x129   : > { %v475_v27 = vshll.u32 %v936_v36, %v472_v21  ;;  %v313_v14 = vadd.s32 536870912, %v312_v4  ;;  %v478_v16 = vshll.u32 %v937_v40, %v472_v21  ;;  %v476_v57 = vshrl.u32 %v937_v40, %v473_v61 }
 0x12a   : > { %v439_v8 = vxor.u32 2147483648, %v438_v59  ;;  %v636_v12 = vor.u32 %v635_v0, %v634_v62  ;;  %v639_v13 = vshll.u32 %v638_v1, 23  ;;  %v479_v38 = vshrl.u32 %v938_v42, %v473_v61 }
 0x12b   : > { %v482_v19 = vshrl.u32 %v939_v44, %v473_v61  ;;  %vm1203_vm10 = vcmp.le.f32.partialorder %v561_v11, 0.7853982  ;;  %v1207_v32 = vshrl.u32 %v313_v14, 30  ;;  %v481_v15 = vshll.u32 %v938_v42, %v472_v21 }
 0x12c   : > { %v440_v17 = vsel %vm357_vm5, %v439_v8, %v438_v59  ;;  %v640_v33 = vor.u32 4788187, %v639_v13  ;;  %v643_v40 = vcvt.s32.f32 %v636_v12  ;;  %v484_v26 = vshll.u32 %v939_v44, %v472_v21 }
 0x12d   : > { %v443_v22 = vsel %vm1167_vm4, %v1015_v5, %v440_v17  ;;  %v485_v28 = vshrl.u32 %v940_v46, %v473_v61  ;;  %v315_v41 = vshll.u32 %v1207_v32, 30  ;;  %v483_v45 = vor.u32 %v482_v19, %v481_v15 }
 0x12e   : > { %856 = vcosq.f32 %v443_v22  ;;  %v641_v35 = vand.u32 2147483647, %v640_v33  ;;  %v477_v11 = vor.u32 %v476_v57, %v475_v27  ;;  %v480_v43 = vor.u32 %v479_v38, %v478_v16 }
 0x12f   : > { %858 = vsinq.f32 %v443_v22  ;;  %v486_v18 = vor.u32 %v485_v28, %v484_v26  ;;  %v488_v37 = vshrl.u32 %v941_v53, %v473_v61  ;;  %v448_v48 = vand.u32 3, %v444_v3 }
 0x130   : > { %v644_v31 = vmul.f32 %v643_v40, %v641_v35  ;;  %v1214_v39 = vsub.s32 %v312_v4, %v315_v41  ;;  %v487_v42 = vshll.u32 %v940_v46, %v472_v21  ;;  %v648_v44 = vsel %vm563_vm9, %v647_v63, %v1135_v47 }
 0x131   : > { %v474_v51 = vshrl.u32 %v936_v36, %v473_v61  ;;  %vm490_vm11 = vcmp.lt.s32.totalorder %v1189_v2, 1  ;;  %vm493_vm12 = vcmp.lt.s32.totalorder %v1189_v2, 4  ;;  %vm491_vm13 = vcmp.lt.s32.totalorder %v1189_v2, 2 }
 0x132   : > { %v645_v52 = vxor.u32 2147483648, %v644_v31  ;;  %v318_v53 = vsub.s32 0, %v1214_v39  ;;  %v489_v7 = vor.u32 %v488_v37, %v487_v42  ;;  %v495_v54 = vsel %vm493_vm12, %v483_v45, 2102212464 }
 0x133   : > { %v498_v46 = vsel %vm490_vm11, %v477_v11, %v480_v43  ;;  %v499_v36 = vsel %vm493_vm12, %v486_v18, 920167782  ;;  %v506_v47 = vshll.u32 %v466_v50, 8  ;;  %vm447_vm14 = vweird.f32 %v1015_v5 }
 0x134   : > { %v646_v20 = vsel %vm563_vm9, %v645_v52, %v644_v31  ;;  %v757_v21 = vmin.u32 %v318_v53, %v1214_v39  ;;  %vm492_vm15 = vcmp.lt.s32.totalorder %v1189_v2, 3  ;;  %v494_v29 = vsel %vm490_vm11, %v474_v51, %v477_v11 }
 0x135   : > { %v649_v55 = vsel %vm1203_vm10, %v1017_v6, %v646_v20  ;;  %v496_v24 = vsel %vm492_vm15, %v480_v43, %v495_v54  ;;  %v500_v50 = vsel %vm492_vm15, %v483_v45, %v499_v36  ;;  %v502_v56 = vsel %vm490_vm11, %v480_v43, %v483_v45 }
 0x136   : > { %860 = vcosq.f32 %v649_v55  ;;  %v320_v58 = vclz %v757_v21  ;;  %v501_v59 = vsel %vm491_vm13, %v498_v46, %v500_v50  ;;  %v503_v3 = vsel %vm493_vm12, %v489_v7, 1326507024 }
 0x137   : > { %862 = vsinq.f32 %v649_v55  ;;  %v504_v61 = vsel %vm492_vm15, %v486_v18, %v503_v3  ;;  %v1250_v62 = vmul.u32.u64.low %v506_v47, %v501_v59  ;;  %v1251_v0 = vmul.u32.u64.high %v506_v47, %v501_v59, %v1250_v62 }
 0x138   : > { %v857_v60 = vpop.eup %856  ;;  %vm450_vm0 = vcmp.eq.s32.totalorder %v448_v48, 0  ;;  %v758_v8 = vadd.s32 4294967294, %v320_v58  ;;  %v505_v63 = vsel %vm491_vm13, %v502_v56, %v504_v61  ;;  %vm453_vm1 = vcmp.eq.s32.totalorder %v448_v48, 2 }
 0x139   : > { %v859_v1 = vpop.eup %858  ;;  %v454_v4 = vxor.u32 2147483648, %v857_v60  ;;  %v1258_v12 = vmul.u32.u64.low %v506_v47, %v505_v63  ;;  %v1259_v13 = vmul.u32.u64.high %v506_v47, %v505_v63, %v1258_v12  ;;  %v650_v16 = vsel %vm1203_vm10, 0, %v648_v44 }
 0x13a   : > { %v451_v27 = vxor.u32 2147483648, %v859_v1  ;;  %vm759_vm2 = vcmp.lt.s32.totalorder %v758_v8, 0  ;;  %v497_v17 = vsel %vm491_vm13, %v494_v29, %v496_v24  ;;  %vm449_vm3 = vcmp.lt.s32.totalorder %v448_v48, 2 }
 0x13b   : > { %v455_v14 = vsel %vm453_vm1, %v454_v4, %v859_v1  ;;  %v323_v38 = vsel %vm759_vm2, 0, %v758_v8  ;;  %v516_v19 = vadd.s32 1, %v1251_v0  ;;  %v308_v33 = vadd.s32 %v1161_v49, %v1158_v30 }
 0x13c   : > { %v452_v57 = vsel %vm450_vm0, %v857_v60, %v451_v27  ;;  %v324_v15 = vsub.s32 32, %v323_v38  ;;  %v328_v40 = vsub.s32 4294967266, %v323_v38  ;;  %v654_v23 = vand.u32 3, %v650_v16 }
 0x13d   : > { %v456_v22 = vsel %vm449_vm3, %v452_v57, %v455_v14  ;;  %v513_v28 = vmul.u32 %v506_v47, %v497_v17  ;;  %vm515_vm4 = vc.u32 %v1259_v13, %v1250_v62  ;;  %v325_v2 = vshll.u32 %v1214_v39, %v323_v38 }
 0x13e   : > { %v457_v26 = vsel %vm447_vm14, nan, %v456_v22  ;;  %v326_v35 = vshrl.u32 %v308_v33, %v324_v15  ;;  %v329_v41 = vadd.s32 127, %v328_v40  ;;  %v517_v30 = vsel %vm515_vm4, %v516_v19, %v1251_v0 }
 0x13f   : > { %665 = vst [vmem:[%s1272_s30 + $0x8] sm:$0xff] %v457_v26  ;;  %v518_v49 = vadd.s32 %v517_v30, %v513_v28  ;;  %vm659_vm5 = vcmp.eq.s32.totalorder %v654_v23, 2  ;;  %vm656_vm6 = vcmp.eq.s32.totalorder %v654_v23, 0  ;;  %vm655_vm7 = vcmp.lt.s32.totalorder %v654_v23, 2 }
 0x140   : > { %v861_v45 = vpop.eup %860  ;;  %v327_v11 = vor.u32 %v326_v35, %v325_v2  ;;  %v330_v5 = vshll.u32 %v329_v41, 23  ;;  %vm653_vm8 = vweird.f32 %v1017_v6  ;;  %vm254_vm9 = vcmp.lt.s32.totalorder %v1021_v9, 0 }
 0x141   : > { %v863_v43 = vpop.eup %862  ;;  %v660_v18 = vxor.u32 2147483648, %v861_v45  ;;  %v519_v37 = vadd.s32 536870912, %v518_v49  ;;  %vm1285_vm10 = vcmp.le.f32.partialorder %v252_v25, 0.7853982  ;;  %v338_v6 = vsub.s32 4, %v1207_v32 }
 0x142   : > { %v657_v48 = vxor.u32 2147483648, %v863_v43  ;;  %v331_v31 = vor.u32 4788187, %v330_v5  ;;  %v334_v52 = vcvt.s32.f32 %v327_v11  ;;  %v514_v3 = vadd.s32 %v1250_v62, %v1259_v13 }
 0x143   : > { %v661_v42 = vsel %vm659_vm5, %v660_v18, %v863_v43  ;;  %v1277_v44 = vshrl.u32 %v519_v37, 30  ;;  %v339_v56 = vsel %vm254_vm9, %v338_v6, %v1207_v32  ;;  %vm344_vm15 = vweird.f32 %v1021_v9 }
 0x144   : > { %v658_v39 = vsel %vm656_vm6, %v861_v45, %v657_v48  ;;  %v332_v51 = vand.u32 2147483647, %v331_v31  ;;  %v341_v25 = vsel %vm1285_vm10, 0, %v339_v56  ;;  %vm460_vm0 = vcmp.lt.s32.totalorder %v1023_v10, 0 }
 0x145   : > { %v662_v53 = vsel %vm655_vm7, %v658_v39, %v661_v42  ;;  %v521_v7 = vshll.u32 %v1277_v44, 30  ;;  %v345_v0 = vand.u32 3, %v341_v25  ;;  %vm459_vm1 = vcmp.le.f32.partialorder %v458_v34, 0.7853982 }
 0x146   : > { %v663_v54 = vsel %vm653_vm8, nan, %v662_v53  ;;  %v335_v46 = vmul.f32 %v334_v52, %v332_v51  ;;  %v544_v26 = vsub.s32 4, %v1277_v44  ;;  %vm550_vm5 = vweird.f32 %v1023_v10 }
 0x147   : > { %667 = vst [vmem:[%s1272_s30 + $0x18] sm:$0xff] %v663_v54  ;;  %v522_v36 = vsub.s32 %v518_v49, %v521_v7  ;;  %vm350_vm12 = vcmp.eq.s32.totalorder %v345_v0, 2  ;;  %vm347_vm13 = vcmp.eq.s32.totalorder %v345_v0, 0  ;;  %vm346_vm14 = vcmp.lt.s32.totalorder %v345_v0, 2 }
 0x148   : > { %v336_v47 = vxor.u32 2147483648, %v335_v46 }
 0x149   : > { %v524_v20 = vsub.s32 0, %v522_v36 }
 0x14a   : > { %v337_v29 = vsel %vm254_vm9, %v336_v47, %v335_v46 }
 0x14b   : > { %v340_v55 = vsel %vm1285_vm10, %v1021_v9, %v337_v29  ;;  %v765_v24 = vmin.u32 %v524_v20, %v522_v36  ;;  %v545_v9 = vsel %vm460_vm0, %v544_v26, %v1277_v44 }
 0x14c   : > { %864 = vcosq.f32 %v340_v55  ;;  %v547_v28 = vsel %vm459_vm1, 0, %v545_v9 }
 0x14d   : > { %866 = vsinq.f32 %v340_v55  ;;  %v526_v50 = vclz %v765_v24  ;;  %v551_v2 = vand.u32 3, %v547_v28 }
 0x14f   : > { %v766_v58 = vadd.s32 4294967294, %v526_v50  ;;  %vm556_vm2 = vcmp.eq.s32.totalorder %v551_v2, 2  ;;  %vm553_vm3 = vcmp.eq.s32.totalorder %v551_v2, 0  ;;  %vm552_vm4 = vcmp.lt.s32.totalorder %v551_v2, 2 }
 0x151   : > { %vm767_vm11 = vcmp.lt.s32.totalorder %v766_v58, 0 }
 0x152   : > { %v529_v59 = vsel %vm767_vm11, 0, %v766_v58 }
 0x153   : > { %v530_v60 = vsub.s32 32, %v529_v59  ;;  %v534_v61 = vsub.s32 4294967266, %v529_v59  ;;  %v531_v1 = vshll.u32 %v522_v36, %v529_v59 }
 0x155   : > { %v532_v4 = vshrl.u32 %v514_v3, %v530_v60  ;;  %v535_v8 = vadd.s32 127, %v534_v61 }
 0x156   : > { %v865_v63 = vpop.eup %864 }
 0x157   : > { %v867_v27 = vpop.eup %866  ;;  %v351_v12 = vxor.u32 2147483648, %v865_v63  ;;  %v533_v32 = vor.u32 %v532_v4, %v531_v1  ;;  %v536_v14 = vshll.u32 %v535_v8, 23 }
 0x158   : > { %v348_v16 = vxor.u32 2147483648, %v867_v27 }
 0x159   : > { %v352_v17 = vsel %vm350_vm12, %v351_v12, %v867_v27  ;;  %v537_v57 = vor.u32 4788187, %v536_v14  ;;  %v540_v19 = vcvt.s32.f32 %v533_v32 }
 0x15a   : > { %v349_v38 = vsel %vm347_vm13, %v865_v63, %v348_v16 }
 0x15b   : > { %v353_v62 = vsel %vm346_vm14, %v349_v38, %v352_v17  ;;  %v538_v13 = vand.u32 2147483647, %v537_v57 }
 0x15c   : > { %v354_v22 = vsel %vm344_vm15, nan, %v353_v62 }
 0x15d   : > { %664 = vst [vmem:[%s1272_s30] sm:$0xff] %v354_v22  ;;  %v541_v33 = vmul.f32 %v540_v19, %v538_v13 }
 0x15f   : > { %v542_v15 = vxor.u32 2147483648, %v541_v33 }
 0x161   : > { %v543_v40 = vsel %vm460_vm0, %v542_v15, %v541_v33 }
 0x162   : > { %v546_v23 = vsel %vm459_vm1, %v1023_v10, %v543_v40 }
 0x163   : > { %868 = vcosq.f32 %v546_v23 }
 0x164   : > { %870 = vsinq.f32 %v546_v23 }
 0x16d   : > { %v869_v35 = vpop.eup %868 }
 0x16e   : > { %v871_v41 = vpop.eup %870  ;;  %v557_v30 = vxor.u32 2147483648, %v869_v35 }
 0x16f   : > { %v554_v34 = vxor.u32 2147483648, %v871_v41 }
 0x170   : > { %v558_v49 = vsel %vm556_vm2, %v557_v30, %v871_v41 }
 0x171   : > { %v555_v45 = vsel %vm553_vm3, %v869_v35, %v554_v34 }
 0x172   : > { %v559_v11 = vsel %vm552_vm4, %v555_v45, %v558_v49 }
 0x173   : > { %v560_v5 = vsel %vm550_vm5, nan, %v559_v11 }
 0x174   : > { %666 = vst [vmem:[%s1272_s30 + $0x10] sm:$0xff] %v560_v5 }
 0x175   : > { %885 = shalt.err (!%p882_p3)
}
 0x176   : > { %s886_s21 = scalar_lea.hbm %s1311_s7, 512  ;;  %s890_s24 = scalar_lea.hbm %s1362_s2, 1024 }
 0x177   : > { %p887_p4 = scmp.ne.s32.totalorder %s1311_s7, %s886_s21  ;;  %p891_p9 = scmp.lt.u32.totalorder %s1311_s7, %s1362_s2 }
 0x178   : > { %p892_p10 = scmp.lt.u32.totalorder %s890_s24, %s886_s21  ;;  %p894_p12 = scmp.lt.u32.totalorder %s886_s21, %s1311_s7 }
 0x179   : > { %p888_p7 = pnand %p887_p4, %p998_p5 }
 0x17a   : > { %p893_p11 = por %p892_p10, %p891_p9 }
 0x17b   : > { %p889_p8 = pneg %p888_p7 }
 0x17c   : > { %p895_p13 = por %p894_p12, %p893_p11 }
 0x17e   : > { %p896_p0 = pnand %p895_p13, %p889_p8 }
 0x180   : > { %899 = shalt.err (!%p896_p0)
}
 0x181   : > { %s943_s27 = smov 128   ;;  %s944_s28 = smov 8  }
 0x182   : > { %809 = dma.vmem_to_hbm [thread:$0]  (%p998_p5), %s1313_s4, 512, %s1311_s7, %s1319_s8, %s943_s27, %s943_s27, %s944_s28  }
 0x183 PF: > { %p815_p1 = scmp.ge.s32.totalorder %s934_s12, 2  ;;  %s697_s29 = sand.u32 1, %s922_s9  }
 0x184   : > { %s698_s30 = scalar_lea.sflag [#allocation3], %s697_s29 }
 0x185   : > { %p812_p2 = pnand %p815_p1, %p1002_p6 }
 0x187   : > { %917 = dma.done.wait (!%p812_p2), %s698_s30, 512  }
 0x188   : > { %919 = vsyncadd (!%p812_p2), %s698_s30, 4294966784  ;;  %p12_p3 = scmp.ge.s32.totalorder %s985_s15, 4   ;;  %s1371_s9 = smov %s926_s10 }
 0x189   : > { %s1372_s10 = smov %s930_s11  ;;  %s1373_s11 = smov %s996_s18 }
 0x18a   : > { %s1374_s12 = smov %s985_s15  ;;  %14 = sbr.rel (!%p12_p3) target bundleno = 3 (0x3), region = 63 }
 0x191   :  { %703 = vsyncpa [#allocation3], 1 }
 0x192   :  { %705 = vsyncpa [#allocation3 + $0x1], 1 }

</bundles_post_ra>
